<compile_context>
chip_gen: v6e
topology: v6e:2x2x1
jax: 0.10.0
libtpu: 0.0.40
codegen_flags: <defaults>
</compile_context>

<pallas_src>
import jax
import jax.numpy as jnp
from jax.experimental import pallas as pl
from jax.experimental.pallas import tpu as pltpu

EPS = 1e-5  # nn.BatchNorm2d default eps


def conv_bn_relu_kernel(w_ref, p_ref, gb_ref, o_ref):
    # w_ref:  (Cout, Kp)       conv weights, Kp = 32 (9*Cin = 27 zero-padded),
    #                          columns ordered (cin, ky, kx).
    # p_ref:  (Kp, M)          im2col'd padded input, M = N*H*W on the lane axis,
    #                          M ordered (n, h, w); pad rows are zero.
    # gb_ref: (Cout, 2)        BN gamma in lane 0, beta in lane 1.
    # o_ref:  (N, Cout, H*W)   fused conv+BN+ReLU output (NCHW after a free reshape).
    # Single MXU matmul with f32 accumulation: conv output in (Cout, M) layout.
    acc = jnp.dot(w_ref[...], p_ref[...], preferred_element_type=jnp.float32)

    # BatchNorm2d training-mode batch stats over (N, H, W) == the lane (M) axis.
    # One pass: mean = s1/M, biased var = s2/M - mean^2 (matches PyTorch fwd),
    # clamped at 0 to guard against cancellation before rsqrt.
    inv_m = 1.0 / acc.shape[1]
    s1 = jnp.sum(acc, axis=1, keepdims=True)            # (Cout, 1)
    s2 = jnp.sum(acc * acc, axis=1, keepdims=True)      # (Cout, 1)
    mean = s1 * inv_m
    var = jnp.maximum(s2 * inv_m - mean * mean, 0.0)
    inv_std = jax.lax.rsqrt(var + EPS)

    # Fold BN into a single per-channel affine, then ReLU.
    scale = gb_ref[:, 0:1] * inv_std                     # (Cout, 1)
    shift = gb_ref[:, 1:2] - mean * scale                # (Cout, 1)
    y = jnp.maximum(acc * scale + shift, 0.0).astype(o_ref.dtype)

    # Per-image stores: H*W is a multiple of 128 for the target shapes, so each
    # (Cout, H*W) slab store is lane-aligned and unmasked (still correct, just
    # masked, for other shapes). N is small and static.
    n_imgs, _, hw = o_ref.shape
    for n in range(n_imgs):
        o_ref[n] = y[:, n * hw:(n + 1) * hw]


def model2_forward(x_nchw, w_oihw, gamma, beta):
    """Conv2d(3->16,k3,s1,p1,bias=False) + BatchNorm2d(16) + ReLU (NCHW in/out)."""
    N, Cin, H, W = x_nchw.shape
    Cout = w_oihw.shape[0]
    HW = H * W
    M = N * HW
    K = Cin * 9
    Kp = 32                               # contraction dim padded to a sublane multiple

    f32 = jnp.float32
    # Wrapper glue (pure layout work). Transpose BEFORE the 9x tap expansion so
    # only the input-sized tensor is physically transposed; the tap stack lands
    # directly in (Cin, 9, N, H, W) order and the reshape to (K, M) is
    # metadata-only. K order (cin, ky, kx) matches w.reshape(Cout, Cin*3*3);
    # M order (n, h, w) maps straight back to NCHW.
    x_pad = jnp.pad(x_nchw.astype(f32), ((0, 0), (0, 0), (1, 1), (1, 1)))
    x_cp = jnp.transpose(x_pad, (1, 0, 2, 3))                       # (Cin, N, H+2, W+2)
    taps = jnp.stack(
        [x_cp[:, :, dy:dy + H, dx:dx + W] for dy in range(3) for dx in range(3)],
        axis=1)                                                     # (Cin, 9, N, H, W)
    patches = jnp.pad(taps.reshape(K, M), ((0, Kp - K), (0, 0)))    # (Kp, M), zero rows
    w2 = jnp.pad(w_oihw.reshape(Cout, K).astype(f32), ((0, 0), (0, Kp - K)))
    gb = jnp.stack([gamma, beta], axis=1).astype(f32)               # (Cout, 2)

    cost = pl.CostEstimate(
        flops=2 * Cout * Kp * M,
        transcendentals=0,
        bytes_accessed=(w2.size + patches.size + gb.size + N * Cout * HW) * 4,
    )

    # Single-shot kernel: at these sizes everything (patches ~64 KiB, out 32 KiB)
    # fits trivially in VMEM, so no grid is needed.
    # TODO(synk): for large N*H*W, tile M with a "parallel" grid axis (uses both
    # v7x TensorCores), budget tiles against v7x's 64 MiB VMEM (vs 128 MiB on
    # v5e/v6e) and raise vmem_limit_bytes, switch BN to two passes (per-tile
    # partial sum/sumsq, then folded affine+ReLU), cast matmul operands to bf16,
    # and fold the im2col into the kernel to kill the 9x HBM read amplification.
    out = pl.pallas_call(
        conv_bn_relu_kernel,
        out_shape=jax.ShapeDtypeStruct((N, Cout, HW), x_nchw.dtype),
        in_specs=[pl.BlockSpec(memory_space=pltpu.MemorySpace.VMEM)] * 3,
        out_specs=pl.BlockSpec(memory_space=pltpu.MemorySpace.VMEM),
        cost_estimate=cost,
    )(w2, patches, gb)

    return out.reshape(N, Cout, H, W)     # metadata-only reshape, no transpose


if __name__ == "__main__":
    key = jax.random.PRNGKey(0)
    k_x, k_w = jax.random.split(key)

    # Small shapes consistent with the module: NCHW input with Cin=3.
    N, Cin, H, W, Cout = 2, 3, 16, 16, 16
    x = jax.random.normal(k_x, (N, Cin, H, W), jnp.float32)
    w = jax.random.normal(k_w, (Cout, Cin, 3, 3), jnp.float32) * 0.1
    gamma = jnp.ones((Cout,), jnp.float32)   # BatchNorm2d default weight
    beta = jnp.zeros((Cout,), jnp.float32)   # BatchNorm2d default bias

    out = jax.block_until_ready(model2_forward(x, w, gamma, beta))

    # Pure-JAX reference (conv -> training-mode BN -> ReLU) for correctness.
    ref_conv = jax.lax.conv_general_dilated(
        x, w, window_strides=(1, 1), padding=((1, 1), (1, 1)),
        dimension_numbers=("NCHW", "OIHW", "NCHW"))
    r_mean = jnp.mean(ref_conv, axis=(0, 2, 3), keepdims=True)
    r_var = jnp.mean((ref_conv - r_mean) ** 2, axis=(0, 2, 3), keepdims=True)
    ref = (ref_conv - r_mean) * jax.lax.rsqrt(r_var + EPS)
    ref = ref * gamma.reshape(1, Cout, 1, 1) + beta.reshape(1, Cout, 1, 1)
    ref = jnp.maximum(ref, 0.0)

    assert out.shape == (N, Cout, H, W), out.shape
    err = float(jnp.max(jnp.abs(out - ref)))
    assert jnp.allclose(out, ref, atol=1e-3, rtol=1e-3), err
    print("KERNEL_OK")
</pallas_src>

<mosaic_0001>
module attributes {stable_mosaic.version = 11 : i64} {
  func.func @conv_bn_relu_kernel(%arg0: memref<16x32xf32, #tpu.memory_space<vmem>>, %arg1: memref<32x512xf32, #tpu.memory_space<vmem>>, %arg2: memref<16x2xf32, #tpu.memory_space<vmem>>, %arg3: memref<2x16x256xf32, #tpu.memory_space<vmem>>) attributes {dimension_semantics = [], scalar_prefetch = 0 : i64, scratch_operands = 0 : i64, tpu.core_type = #tpu.core_type<tc>} {
    %c0 = arith.constant 0 : index
    %c0_0 = arith.constant 0 : index
    %0 = vector.load %arg0[%c0, %c0_0] : memref<16x32xf32, #tpu.memory_space<vmem>>, vector<16x32xf32>
    %c0_1 = arith.constant 0 : index
    %c0_2 = arith.constant 0 : index
    %1 = vector.load %arg1[%c0_1, %c0_2] : memref<32x512xf32, #tpu.memory_space<vmem>>, vector<32x512xf32>
    %cst = arith.constant dense<0.000000e+00> : vector<16x512xf32>
    %2 = tpu.matmul %0, %1, %cst {dimension_numbers = #tpu.dot_dimension_numbers<[1], [0], [0], [1], [0, 0, 1, 1], [], []>} : vector<16x32xf32>, vector<32x512xf32>, vector<16x512xf32> -> vector<16x512xf32>
    %cst_3 = arith.constant dense<0.000000e+00> : vector<16xf32>
    %3 = vector.multi_reduction <add>, %2, %cst_3 [1] : vector<16x512xf32> to vector<16xf32>
    %4 = vector.shape_cast %3 : vector<16xf32> to vector<16x1xf32>
    %5 = arith.mulf %2, %2 : vector<16x512xf32>
    %cst_4 = arith.constant dense<0.000000e+00> : vector<16xf32>
    %6 = vector.multi_reduction <add>, %5, %cst_4 [1] : vector<16x512xf32> to vector<16xf32>
    %7 = vector.shape_cast %6 : vector<16xf32> to vector<16x1xf32>
    %cst_5 = arith.constant 0.001953125 : f32
    %8 = vector.broadcast %cst_5 : f32 to vector<16x1xf32>
    %9 = arith.mulf %4, %8 : vector<16x1xf32>
    %cst_6 = arith.constant 0.001953125 : f32
    %10 = vector.broadcast %cst_6 : f32 to vector<16x1xf32>
    %11 = arith.mulf %7, %10 : vector<16x1xf32>
    %12 = arith.mulf %9, %9 : vector<16x1xf32>
    %13 = arith.subf %11, %12 : vector<16x1xf32>
    %cst_7 = arith.constant 0.000000e+00 : f32
    %14 = vector.broadcast %cst_7 : f32 to vector<16x1xf32>
    %15 = arith.maximumf %13, %14 : vector<16x1xf32>
    %cst_8 = arith.constant 9.99999974E-6 : f32
    %16 = vector.broadcast %cst_8 : f32 to vector<16x1xf32>
    %17 = arith.addf %15, %16 : vector<16x1xf32>
    %18 = math.rsqrt %17 : vector<16x1xf32>
    %c0_9 = arith.constant 0 : index
    %c0_10 = arith.constant 0 : index
    %19 = vector.load %arg2[%c0_9, %c0_10] : memref<16x2xf32, #tpu.memory_space<vmem>>, vector<16x1xf32>
    %20 = arith.mulf %19, %18 : vector<16x1xf32>
    %c0_11 = arith.constant 0 : index
    %c1 = arith.constant 1 : index
    %21 = vector.load %arg2[%c0_11, %c1] : memref<16x2xf32, #tpu.memory_space<vmem>>, vector<16x1xf32>
    %22 = arith.mulf %9, %20 : vector<16x1xf32>
    %23 = arith.subf %21, %22 : vector<16x1xf32>
    %24 = vector.broadcast %20 : vector<16x1xf32> to vector<16x512xf32>
    %25 = arith.mulf %2, %24 : vector<16x512xf32>
    %26 = vector.broadcast %23 : vector<16x1xf32> to vector<16x512xf32>
    %27 = arith.addf %25, %26 : vector<16x512xf32>
    %cst_12 = arith.constant 0.000000e+00 : f32
    %28 = vector.broadcast %cst_12 : f32 to vector<16x512xf32>
    %29 = arith.maximumf %27, %28 : vector<16x512xf32>
    %30 = vector.extract_strided_slice %29 {offsets = [0, 0], sizes = [16, 256], strides = [1, 1]} : vector<16x512xf32> to vector<16x256xf32>
    %c0_13 = arith.constant 0 : index
    %c0_14 = arith.constant 0 : index
    %c0_15 = arith.constant 0 : index
    %31 = vector.load %arg3[%c0_13, %c0_14, %c0_15] : memref<2x16x256xf32, #tpu.memory_space<vmem>>, vector<1x16x256xf32>
    %32 = vector.shape_cast %31 : vector<1x16x256xf32> to vector<16x256xf32>
    %33 = vector.shape_cast %30 : vector<16x256xf32> to vector<1x16x256xf32>
    tpu.vector_store %arg3[%c0_13, %c0_14, %c0_15], %33 {strides = array<i32>} : memref<2x16x256xf32, #tpu.memory_space<vmem>>, vector<1x16x256xf32>,
    %34 = vector.extract_strided_slice %29 {offsets = [0, 256], sizes = [16, 256], strides = [1, 1]} : vector<16x512xf32> to vector<16x256xf32>
    %c1_16 = arith.constant 1 : index
    %c0_17 = arith.constant 0 : index
    %c0_18 = arith.constant 0 : index
    %35 = vector.load %arg3[%c1_16, %c0_17, %c0_18] : memref<2x16x256xf32, #tpu.memory_space<vmem>>, vector<1x16x256xf32>
    %36 = vector.shape_cast %35 : vector<1x16x256xf32> to vector<16x256xf32>
    %37 = vector.shape_cast %34 : vector<16x256xf32> to vector<1x16x256xf32>
    tpu.vector_store %arg3[%c1_16, %c0_17, %c0_18], %37 {strides = array<i32>} : memref<2x16x256xf32, #tpu.memory_space<vmem>>, vector<1x16x256xf32>,
    return
  }
}

</mosaic_0001>

<bundles_post_ra>
// kernel: tpu_custom_call.1
= control target key start
LH: loop header
LB: loop body
LE: loop exit
PB: predicated region body
PF: predicated region fallthrough
CT: control target
= control target key end

     0   :  { %8 = vsyncpa [#allocation3], 0  ;;  %s497_s0 = inlined_call_operand.vmem [shape: f32[16,32], index: 0, kind: input, shape index: {}]   ;;  %s498_s1 = inlined_call_operand.hbm [shape: f32[32,512], index: 1, kind: input, shape index: {}]   ;;  %s499_s2 = inlined_call_operand.vmem [shape: f32[16,2], index: 2, kind: input, shape index: {}]   ;;  %s500_s3 = inlined_call_operand.hbm [shape: f32[2,16,256], index: 3, kind: output, shape index: {}]  }
   0x1   :  { %9 = vsyncpa [#allocation4], 0  ;;  %s401_s12 = smov [#allocation2]  }
   0x2   :  { %s17_s13 = sshll.u32 %s401_s12, 4  ;;  %s18_s13 = int_to_ptr.vmem [resolvable:$true] %s17_s13 }
   0x3   :  { %s365_s14 = scalar_lea.vmem %s18_s13, 2048  ;;  %p370_p1 = scmp.lt.s32.totalorder %s18_s13, %s18_s13 }
   0x4   :  { %p366_p0 = scmp.ne.s32.totalorder %s18_s13, %s365_s14  ;;  %p371_p2 = scmp.lt.s32.totalorder %s365_s14, %s365_s14 }
   0x6   :  { %p372_p3 = por %p371_p2, %p370_p1 }
   0x8   :  { %p373_p4 = pnand %p372_p3, %p366_p0 }
   0xa   :  { %376 = shalt.err (!%p373_p4)
}
   0xb   :  { %s402_s15 = smov 512   ;;  %s403_s16 = smov 32  }
   0xc   :  { %23 = dma.hbm_to_vmem [thread:$0]  %s498_s1, 2048, %s18_s13, [#allocation3], %s402_s15, %s402_s15, %s403_s16  }
   0xd   :  { %397 = dma.done.wait [#allocation3], 2048  }
   0xe   :  { %398 = vsyncadd [#allocation3], 4294965248  ;;  %v404_v0 = vmov 0.0   ;;  %v44_v1 = vld [vmem:[#allocation2 + $0x68] sm:$0xff]  ;;  %v43_v2 = vld [vmem:[#allocation2 + $0x60] sm:$0xff]  ;;  %vm47_vm0 = vcmask 261120  }
   0xf   :  { %118 = vmatprep.mubr.f32.mxu0 %v404_v0  ;;  %195 = vmatprep.mubr.f32.mxu1 %v404_v0  ;;  %v40_v3 = vld [vmem:[#allocation2 + $0x48] sm:$0xff]  ;;  %v46_v4 = vld [vmem:[#allocation2 + $0x78] sm:$0xff]  ;;  %v39_v5 = vld [vmem:[#allocation2 + $0x40] sm:$0xff]  ;;  %v405_v47 = vmov 0   ;;  %s407_s25 = smov 1  }
  0x10   :  { %78 = vmatprep.subr.mxu0 %v44_v1  ;;  %v45_v6 = vld [vmem:[#allocation2 + $0x70] sm:$0xff]  ;;  %155 = vmatprep.subr.mxu1 %v46_v4  ;;  %v36_v7 = vld [vmem:[#allocation2 + $0x28] sm:$0xff]  ;;  %v42_v8 = vld [vmem:[#allocation2 + $0x58] sm:$0xff] }
  0x11   :  { %79 = vmatpush1.msra.mxu0 %v43_v2  ;;  %156 = vmatpush1.msra.mxu1 %v45_v6  ;;  %v35_v9 = vld [vmem:[#allocation2 + $0x20] sm:$0xff]  ;;  %v41_v10 = vld [vmem:[#allocation2 + $0x50] sm:$0xff]  ;;  %v38_v11 = vld [vmem:[#allocation2 + $0x38] sm:$0xff] }
  0x12   :  { %80 = vmatprep.subr.mxu0 %v40_v3  ;;  %157 = vmatprep.subr.mxu1 %v42_v8  ;;  %v32_v12 = vld [vmem:[#allocation2 + $0x8] sm:$0xff]  ;;  %v37_v13 = vld [vmem:[#allocation2 + $0x30] sm:$0xff]  ;;  %v31_v14 = vld [vmem:[#allocation2] sm:$0xff] }
  0x13   :  { %81 = vmatpush1.msra.mxu0 %v39_v5  ;;  %158 = vmatpush1.msra.mxu1 %v41_v10  ;;  %v34_v15 = vld [vmem:[#allocation2 + $0x18] sm:$0xff]  ;;  %v29_v16 = vld [vmem:[%s497_s0] sm:$0xff]  ;;  %v33_v17 = vld [vmem:[#allocation2 + $0x10] sm:$0xff] }
  0x14   :  { %82 = vmatprep.subr.mxu0 %v36_v7  ;;  %159 = vmatprep.subr.mxu1 %v38_v11  ;;  %v30_v18 = vld [vmem:[%s497_s0 + $0x8] sm:$0xff]  ;;  %v250_v1 = vld [vmem:[%s499_s2] sm:$0xff] }
  0x15   :  { %83 = vmatpush1.msra.mxu0 %v35_v9  ;;  %160 = vmatpush1.msra.mxu1 %v37_v13  ;;  %v251_v4 = vld [vmem:[%s499_s2 + $0x8] sm:$0xff]  ;;  %s408_s2 = smov [#allocation5]  }
  0x16   :  { %84 = vmatprep.subr.mxu0 %v32_v12  ;;  %161 = vmatprep.subr.mxu1 %v34_v15  ;;  %s324_s26 = sshll.u32 %s408_s2, 4  ;;  %s325_s26 = int_to_ptr.vmem [resolvable:$true] %s324_s26 }
  0x17   :  { %85 = vmatpush1.msra.mxu0 %v31_v14  ;;  %162 = vmatpush1.msra.mxu1 %v33_v17  ;;  %s377_s27 = scalar_lea.vmem %s325_s26, 1024  ;;  %p382_p6 = scmp.lt.s32.totalorder %s325_s26, %s325_s26 }
  0x18   :  { %336 = vmatmul.mubr.msk.f32.vlgmr.msra.gmra.mxu0 %vm47_vm0, %v29_v16  ;;  %338 = vmatmul.mubr.msk.f32.vlgmr.msra.gmra.mxu1 %vm47_vm0, %v29_v16  ;;  %p378_p5 = scmp.ne.s32.totalorder %s325_s26, %s377_s27  ;;  %p383_p7 = scmp.lt.s32.totalorder %s377_s27, %s377_s27 }
  0x19   :  { %124 = vmatprep.mubr.f32.mxu0 %v404_v0  ;;  %201 = vmatprep.mubr.f32.mxu1 %v404_v0  ;;  %v406_v0 = vmov 1  }
  0x1a   :  { %350 = vset.pattern.permute.xlu1 %v405_v47  ;;  %351 = vset.pattern.permute.xlu0 %v406_v0  ;;  %p384_p8 = por %p383_p7, %p382_p6 }
  0x1c   :  { %337 = vmatmul.mubr.msk.f32.gmra.mxu0 %vm47_vm0, %v30_v18  ;;  %339 = vmatmul.mubr.msk.f32.gmra.mxu1 %vm47_vm0, %v30_v18  ;;  %p385_p9 = pnand %p384_p8, %p378_p5 }
  0xd8   :  { %v440_v19 = vpop.f32.mrf.mxu0  ;;  %v442_v20 = vpop.f32.mrf.mxu1 }
  0xd9   :  { %v218_v22 = vmul.f32 %v440_v19, %v440_v19  ;;  %v220_v25 = vmul.f32 %v442_v20, %v442_v20 }
  0xda   :  { %v444_v21 = vpop.f32.mrf.mxu0  ;;  %v454_v26 = vpop.f32.mrf.mxu1 }
  0xdb   :  { %v208_v23 = vadd.f32 %v444_v21, %v440_v19  ;;  %v219_v24 = vmul.f32 %v444_v21, %v444_v21  ;;  %v221_v34 = vmul.f32 %v454_v26, %v454_v26 }
  0xdc   :  { %v456_v27 = vpop.f32.mrf.mxu0  ;;  %v458_v28 = vpop.f32.mrf.mxu1 }
  0xdd   :  { %v209_v29 = vadd.f32 %v208_v23, %v442_v20  ;;  %v226_v30 = vadd.f32 %v219_v24, %v218_v22  ;;  %v222_v31 = vmul.f32 %v456_v27, %v456_v27  ;;  %v224_v33 = vmul.f32 %v458_v28, %v458_v28 }
  0xde   :  { %v463_v32 = vpop.f32.mrf.mxu0  ;;  %v474_v39 = vpop.f32.mrf.mxu1 }
  0xdf   :  { %v213_v35 = vadd.f32 %v463_v32, %v456_v27  ;;  %v223_v36 = vmul.f32 %v463_v32, %v463_v32  ;;  %v210_v37 = vadd.f32 %v209_v29, %v454_v26  ;;  %v227_v38 = vadd.f32 %v226_v30, %v220_v25 }
  0xe0   :  { %v225_v43 = vmul.f32 %v474_v39, %v474_v39 }
  0xe1   :  { %v231_v40 = vadd.f32 %v223_v36, %v222_v31  ;;  %211 = vadd.xlane.f32.xlu0 %v210_v37  ;;  %v228_v41 = vadd.f32 %v227_v38, %v221_v34  ;;  %v214_v42 = vadd.f32 %v213_v35, %v458_v28 }
  0xe3   :  { %229 = vadd.xlane.f32.xlu1 %v228_v41  ;;  %v215_v44 = vadd.f32 %v214_v42, %v474_v39  ;;  %v232_v45 = vadd.f32 %v231_v40, %v224_v33 }
  0xe5   :  { %216 = vadd.xlane.f32.xlu0 %v215_v44  ;;  %v233_v46 = vadd.f32 %v232_v45, %v225_v43 }
  0xe7   :  { %234 = vadd.xlane.f32.xlu1 %v233_v46 }
 0x16a   :  { %v212_v48 = vpop.xlane.xlu0 %211 }
 0x16b   :  { %v236_v49 = vmul.f32 0.001953125, %v212_v48 }
 0x16c   :  { %v230_v50 = vpop.xlane.xlu1 %229 }
 0x16d   :  { %v240_v51 = vmul.f32 %v236_v49, %v236_v49  ;;  %v238_v52 = vmul.f32 0.001953125, %v230_v50 }
 0x16e   :  { %v217_v53 = vpop.xlane.xlu0 %216 }
 0x16f   :  { %v242_v54 = vsub.f32 %v238_v52, %v240_v51  ;;  %v237_v55 = vmul.f32 0.001953125, %v217_v53 }
 0x170   :  { %v235_v56 = vpop.xlane.xlu1 %234 }
 0x171   :  { %v244_v57 = vmax.f32 %v242_v54, 0.0  ;;  %v241_v58 = vmul.f32 %v237_v55, %v237_v55  ;;  %v239_v59 = vmul.f32 0.001953125, %v235_v56 }
 0x173   :  { %v246_v60 = vadd.f32 1e-05, %v244_v57  ;;  %v243_v61 = vsub.f32 %v239_v59, %v241_v58 }
 0x175   :  { %353 = vrsqrt.f32 %v246_v60  ;;  %v245_v62 = vmax.f32 %v243_v61, 0.0 }
 0x177   :  { %v247_v63 = vadd.f32 1e-05, %v245_v62 }
 0x179   :  { %355 = vrsqrt.f32 %v247_v63 }
 0x182   :  { %v354_v2 = vpop.eup %353 }
 0x183   :  { %v252_v3 = vmul.f32 %v354_v2, %v250_v1 }
 0x185   :  { %v254_v5 = vmul.f32 %v252_v3, %v236_v49 }
 0x186   :  { %v356_v6 = vpop.eup %355 }
 0x187   :  { %258 = vrot.lane.b32.xlu0 %v254_v5, %s407_s25  ;;  %v253_v7 = vmul.f32 %v356_v6, %v251_v4 }
 0x189   :  { %v255_v8 = vmul.f32 %v253_v7, %v237_v55 }
 0x18b   :  { %260 = vrot.lane.b32.xlu1 %v255_v8, %s407_s25 }
 0x18f   :  { %268 = vperm.xlu1 %350, %v252_v3  }
 0x193   :  { %273 = vperm.xlu1 %350, %v253_v7  }
 0x197   :  { %352 = vset.pattern.permute.xlu1 %v406_v0 }
 0x1f9   :  { %v259_v9 = vpop.permute.xlu0 %258 }
 0x1fa   :  { %v264_v10 = vsub.f32 %v250_v1, %v259_v9 }
 0x1fc   :  { %286 = vperm.xlu0 %351, %v264_v10  }
 0x1fd   :  { %v261_v11 = vpop.permute.xlu1 %260 }
 0x1fe   :  { %v265_v12 = vsub.f32 %v251_v4, %v261_v11 }
 0x200   :  { %291 = vperm.xlu1 %352, %v265_v12  }
 0x20a   :  { %v269_v13 = vpop.permute.xlu1 %268 }
 0x20b   :  { %v276_v15 = vmul.f32 %v269_v13, %v440_v19  ;;  %v277_v16 = vmul.f32 %v269_v13, %v444_v21  ;;  %v278_v17 = vmul.f32 %v269_v13, %v442_v20  ;;  %v279_v18 = vmul.f32 %v269_v13, %v454_v26 }
 0x20e   :  { %v274_v14 = vpop.permute.xlu1 %273 }
 0x20f   :  { %v280_v30 = vmul.f32 %v274_v14, %v456_v27  ;;  %v281_v31 = vmul.f32 %v274_v14, %v463_v32  ;;  %v282_v33 = vmul.f32 %v274_v14, %v458_v28  ;;  %v283_v34 = vmul.f32 %v274_v14, %v474_v39 }
 0x277   :  { %v287_v22 = vpop.permute.xlu0 %286 }
 0x278   :  { %v294_v23 = vadd.f32 %v287_v22, %v276_v15  ;;  %v295_v24 = vadd.f32 %v287_v22, %v277_v16  ;;  %v296_v25 = vadd.f32 %v287_v22, %v278_v17  ;;  %v297_v29 = vadd.f32 %v287_v22, %v279_v18 }
 0x27a   :  { %v302_v19 = vmax.f32 %v294_v23, 0.0  ;;  %v303_v35 = vmax.f32 %v295_v24, 0.0  ;;  %v304_v21 = vmax.f32 %v296_v25, 0.0  ;;  %v305_v36 = vmax.f32 %v297_v29, 0.0 }
 0x27b   :  { %v292_v20 = vpop.permute.xlu1 %291 }
 0x27c   :  { %310 = vst [vmem:[#allocation5] sm:$0xff] %v302_v19  ;;  %311 = vst [vmem:[#allocation5 + $0x8] sm:$0xff] %v303_v35  ;;  %v298_v26 = vadd.f32 %v292_v20, %v280_v30  ;;  %v299_v37 = vadd.f32 %v292_v20, %v281_v31  ;;  %v300_v27 = vadd.f32 %v292_v20, %v282_v33 }
 0x27d   :  { %315 = vst [vmem:[#allocation5 + $0x20] sm:$0xff] %v304_v21  ;;  %316 = vst [vmem:[#allocation5 + $0x28] sm:$0xff] %v305_v36  ;;  %v301_v38 = vadd.f32 %v292_v20, %v283_v34 }
 0x27e   :  { %v306_v32 = vmax.f32 %v298_v26, 0.0  ;;  %v307_v28 = vmax.f32 %v299_v37, 0.0  ;;  %v308_v40 = vmax.f32 %v300_v27, 0.0 }
 0x27f   :  { %v309_v39 = vmax.f32 %v301_v38, 0.0 }
 0x280   :  { %312 = vst [vmem:[#allocation5 + $0x10] sm:$0xff] %v306_v32  ;;  %313 = vst [vmem:[#allocation5 + $0x18] sm:$0xff] %v307_v28 }
 0x281   :  { %317 = vst [vmem:[#allocation5 + $0x30] sm:$0xff] %v308_v40  ;;  %318 = vst [vmem:[#allocation5 + $0x38] sm:$0xff] %v309_v39 }
 0x282   :  { %388 = shalt.err (!%p385_p9)
}
 0x283   :  { %s409_s28 = smov 256   ;;  %s410_s29 = smov 16  }
 0x284   :  { %330 = dma.vmem_to_hbm [thread:$0]  %s325_s26, 1024, %s500_s3, [#allocation4], %s409_s28, %s409_s28, %s410_s29  }
 0x285   :  { %399 = dma.done.wait [#allocation4], 1024  }
 0x286   :  { %400 = vsyncadd [#allocation4], 4294966272 }
 0x287   :  { %334 = vsyncpa [#allocation3], 1 }
 0x288   :  { %335 = vsyncpa [#allocation4], 1 }

</bundles_post_ra>
